<compile_context>
chip_gen: v7x
topology: tpu7x:2x2x1
jax: 0.10.0
libtpu: 0.0.40
codegen_flags: <defaults>
</compile_context>

<pallas_src>
import functools

import jax
import jax.numpy as jnp
import numpy as np
from jax import lax
from jax.experimental import pallas as pl
from jax.experimental.pallas import tpu as pltpu


def _ccc_stats_kernel(vout_ref, vlab_ref, aout_ref, alab_ref, fac_ref, acc_ref,
                      *, true_t, t_tile, chunk, n_chunks, needs_mask, unroll):
    """Streams the T axis, accumulating per-row sufficient statistics.

    vout_ref/vlab_ref/aout_ref/alab_ref : (B, t_tile) input blocks
    fac_ref : (6, B, 128) output, lane-broadcast column vectors
              [r_v, num_v, d2_v, r_a, num_a, d2_a]
    acc_ref : (10, B, 1) VMEM scratch, 5 stats x 2 streams
              [sum x, sum y, sum x^2, sum y^2, sum x*y]
    """
    b = vout_ref.shape[0]
    t_idx = pl.program_id(0)
    n_t = pl.num_programs(0)

    @pl.when(t_idx == 0)
    def _init():
        acc_ref[...] = jnp.zeros_like(acc_ref)

    streams = ((vout_ref, vlab_ref), (aout_ref, alab_ref))  # (x, y) per torch call
    if needs_mask:
        lane = lax.broadcasted_iota(jnp.int32, (b, chunk), 1)
        col0 = t_idx * t_tile

    def chunk_body(c, carry):
        start = pl.multiple_of(c * chunk, 128)
        out = []
        for s, (xr, yr) in enumerate(streams):
            x = xr[:, pl.ds(start, chunk)].astype(jnp.float32)
            y = yr[:, pl.ds(start, chunk)].astype(jnp.float32)
            if needs_mask:
                valid = (col0 + start + lane) < true_t
                x = jnp.where(valid, x, 0.0)
                y = jnp.where(valid, y, 0.0)
            sx, sy, sxx, syy, sxy = carry[s]
            out.append((sx + jnp.sum(x, -1, keepdims=True),
                        sy + jnp.sum(y, -1, keepdims=True),
                        sxx + jnp.sum(x * x, -1, keepdims=True),
                        syy + jnp.sum(y * y, -1, keepdims=True),
                        sxy + jnp.sum(x * y, -1, keepdims=True)))
        return tuple(out)

    zeros = tuple(tuple(jnp.zeros((b, 1), jnp.float32) for _ in range(5))
                  for _ in range(2))
    sums = lax.fori_loop(0, n_chunks, chunk_body, zeros, unroll=unroll)

    # One small scratch update per grid step (not per chunk).
    for s in range(2):
        for k in range(5):
            acc_ref[5 * s + k] += sums[s][k]

    @pl.when(t_idx == n_t - 1)
    def _finalize():
        t = jnp.float32(true_t)
        for s in range(2):
            sx = acc_ref[5 * s + 0]
            sy = acc_ref[5 * s + 1]
            sxx = acc_ref[5 * s + 2]
            syy = acc_ref[5 * s + 3]
            sxy = acc_ref[5 * s + 4]
            x_m = sx / t
            y_m = sy / t
            # torch.std default is unbiased (divide by T-1); clamp the
            # sufficient-statistics variance at 0 against f32 rounding.
            x_s = jnp.sqrt(jnp.maximum(sxx - sx * x_m, 0.0) / (t - 1.0))
            y_s = jnp.sqrt(jnp.maximum(syy - sy * y_m, 0.0) / (t - 1.0))
            x_s = jnp.where(x_s == 0.0, jnp.float32(1e-6), x_s)
            y_s = jnp.where(y_s == 0.0, jnp.float32(1e-6), y_s)
            den = (x_s * y_s + 1e-6) * (
                x_s * x_s + y_s * y_s + (x_m - y_m) ** 2 + 1e-6)
            r = (2.0 * x_s * y_s) / den          # (B, 1) row factor of ccc[i, j]
            num = (sxy - sx * sy / t) / t        # (B, 1) biased mean(vx*vy, -1)
            d2 = sxx + syy - 2.0 * sxy           # (B, 1) sum (x - y)^2 (for MSE)
            # Lane-dense (128-wide, unmasked vst) writes of column vectors.
            fac_ref[3 * s + 0] = jnp.broadcast_to(r, (b, 128))
            fac_ref[3 * s + 1] = jnp.broadcast_to(num, (b, 128))
            fac_ref[3 * s + 2] = jnp.broadcast_to(d2, (b, 128))


def ccc_loss_pallas(v_label, vout, a_label, aout, *,
                    block_bytes_per_input=1 << 20):
    """Returns (ccc_loss, mae_loss, v_ccc, a_ccc) exactly like CCC_loss.forward."""
    B, T = v_label.shape
    assert vout.shape == (B, T) and a_label.shape == (B, T) and aout.shape == (B, T)
    f32 = jnp.float32

    # Inner strip (lanes): keep roughly <= 4 f32 vregs live per plane.
    b8 = max(8, -(-B // 8) * 8)
    t128 = -(-T // 128) * 128
    chunk = min(t128, max(128, (4096 // b8) // 128 * 128))

    # T tile: as large as the per-step byte budget allows (multiple of chunk);
    # the grid is a cdiv and the ragged tail is masked inside the kernel.
    t_full = -(-T // chunk) * chunk
    t_cap = max(chunk, (block_bytes_per_input // (B * 4)) // chunk * chunk)
    t_tile = min(t_full, t_cap)
    n_t = -(-T // t_tile)
    n_chunks = t_tile // chunk
    needs_mask = (n_t * t_tile != T)
    unroll = n_chunks if n_chunks <= 8 else 8

    kernel = functools.partial(
        _ccc_stats_kernel, true_t=T, t_tile=t_tile, chunk=chunk,
        n_chunks=n_chunks, needs_mask=needs_mask, unroll=unroll)

    in_spec = pl.BlockSpec((B, t_tile), lambda t: (0, t))
    fac = pl.pallas_call(
        kernel,
        out_shape=jax.ShapeDtypeStruct((6, B, 128), f32),
        grid=(n_t,),
        in_specs=[in_spec, in_spec, in_spec, in_spec],
        out_specs=pl.BlockSpec((6, B, 128), lambda t: (0, 0, 0)),
        scratch_shapes=[pltpu.VMEM((10, B, 1), f32)],
        compiler_params=pltpu.CompilerParams(
            dimension_semantics=("arbitrary",),          # T is the reduction axis
            vmem_limit_bytes=32 * 1024 * 1024),
    )(vout, v_label, aout, a_label)

    # TODO(synk): engaging v7x's second TensorCore would need the V/A stream as
    # a leading size-2 "parallel" grid axis, which requires re-stacking the
    # inputs (an extra full HBM pass) — net negative here, so left single-core.

    # Rank-1 finalize in XLA: ccc[i, j] = 1 - r[i] * num[j] (the exact
    # (B,) vs (B,1) broadcast of the torch module), plus v+a and the MAE.
    r_v, num_v, d2_v = fac[0, :, 0], fac[1, :, 0], fac[2, :, 0]
    r_a, num_a, d2_a = fac[3, :, 0], fac[4, :, 0], fac[5, :, 0]
    v_ccc = 1.0 - r_v[:, None] * num_v[None, :]
    a_ccc = 1.0 - r_a[:, None] * num_a[None, :]
    ccc_loss = v_ccc + a_ccc
    mae_loss = (jnp.sum(d2_v) + jnp.sum(d2_a)) / (2.0 * B * T)
    return ccc_loss, mae_loss, v_ccc, a_ccc


def _ccc_loss_ref(v_label, vout, a_label, aout):
    # Pure-JAX reference mirroring the PyTorch module (for sanity check).
    def cal(x, y):
        x_m = jnp.mean(x, -1, keepdims=True)
        y_m = jnp.mean(y, -1, keepdims=True)
        x_s = jnp.std(x, -1, ddof=1, keepdims=True)
        y_s = jnp.std(y, -1, ddof=1, keepdims=True)
        x_s = jnp.where(x_s == 0, 1e-6, x_s)
        y_s = jnp.where(y_s == 0, 1e-6, y_s)
        vx, vy = x - x_m, y - y_m
        rho = jnp.mean(vx * vy, -1) / (x_s * y_s + 1e-6)
        ccc = 2 * rho * x_s * y_s / (x_s ** 2 + y_s ** 2 + (x_m - y_m) ** 2 + 1e-6)
        return 1 - ccc

    v_ccc = cal(vout, v_label)
    a_ccc = cal(aout, a_label)
    mae = (jnp.mean((vout - v_label) ** 2) + jnp.mean((aout - a_label) ** 2)) / 2
    return v_ccc + a_ccc, mae, v_ccc, a_ccc


if __name__ == "__main__":
    base_key = jax.random.PRNGKey(0)

    def run_case(B, T, **kw):
        ks = jax.random.split(jax.random.fold_in(base_key, B * 100003 + T), 4)
        v_label = jax.random.normal(ks[0], (B, T), dtype=jnp.float32)
        Vout = jax.random.normal(ks[1], (B, T), dtype=jnp.float32)
        a_label = jax.random.normal(ks[2], (B, T), dtype=jnp.float32)
        Aout = jax.random.normal(ks[3], (B, T), dtype=jnp.float32)

        fn = jax.jit(functools.partial(ccc_loss_pallas, **kw))
        outs = jax.block_until_ready(fn(v_label, Vout, a_label, Aout))
        refs = _ccc_loss_ref(v_label, Vout, a_label, Aout)
        for o, r in zip(outs, refs):
            np.testing.assert_allclose(np.asarray(o), np.asarray(r),
                                       rtol=1e-5, atol=1e-5)

    run_case(2, 384)                                     # single tile, masked tail
    run_case(2, 1500, block_bytes_per_input=8 * 1024)    # multi-step grid + chunks
    run_case(5, 200)                                     # B not a multiple of 8

    print("KERNEL_OK")
</pallas_src>

<mosaic_0001>
module attributes {stable_mosaic.version = 11 : i64} {
  func.func @_ccc_stats_kernel(%arg0: i32, %arg1: memref<2x384xf32, #tpu.memory_space<vmem>>, %arg2: memref<2x384xf32, #tpu.memory_space<vmem>>, %arg3: memref<2x384xf32, #tpu.memory_space<vmem>>, %arg4: memref<2x384xf32, #tpu.memory_space<vmem>>, %arg5: memref<6x2x128xf32, #tpu.memory_space<vmem>>, %arg6: memref<10x2x1xf32, #tpu.memory_space<vmem>>) attributes {dimension_semantics = [#tpu.dimension_semantics<arbitrary>], iteration_bounds = array<i64: 1>, scalar_prefetch = 0 : i64, scratch_operands = 1 : i64, tpu.core_type = #tpu.core_type<tc>, window_params = [{transform_indices = @transform_0, window_bounds = array<i64: 2, 384>}, {transform_indices = @transform_1, window_bounds = array<i64: 2, 384>}, {transform_indices = @transform_2, window_bounds = array<i64: 2, 384>}, {transform_indices = @transform_3, window_bounds = array<i64: 2, 384>}, {pipeline_mode = #tpu.pipeline_mode<synchronous>, transform_indices = @transform_4, window_bounds = array<i64: 6, 2, 128>}]} {
    %c0_i32 = arith.constant 0 : i32
    %0 = arith.cmpi eq, %arg0, %c0_i32 : i32
    %1 = arith.extui %0 : i1 to i32
    %c0_i32_0 = arith.constant 0 : i32
    %2 = arith.cmpi ne, %1, %c0_i32_0 : i32
    scf.if %2 {
      %cst_77 = arith.constant 0.000000e+00 : f32
      %122 = vector.broadcast %cst_77 : f32 to vector<10x2x1xf32>
      %c0_78 = arith.constant 0 : index
      %c0_79 = arith.constant 0 : index
      %c0_80 = arith.constant 0 : index
      %123 = vector.load %arg6[%c0_78, %c0_79, %c0_80] : memref<10x2x1xf32, #tpu.memory_space<vmem>>, vector<10x2x1xf32>
      tpu.vector_store %arg6[%c0_78, %c0_79, %c0_80], %122 {strides = array<i32>} : memref<10x2x1xf32, #tpu.memory_space<vmem>>, vector<10x2x1xf32>,
    } else {
    }
    %cst = arith.constant 0.000000e+00 : f32
    %3 = vector.broadcast %cst : f32 to vector<2x1xf32>
    %cst_1 = arith.constant 0.000000e+00 : f32
    %4 = vector.broadcast %cst_1 : f32 to vector<2x1xf32>
    %cst_2 = arith.constant 0.000000e+00 : f32
    %5 = vector.broadcast %cst_2 : f32 to vector<2x1xf32>
    %cst_3 = arith.constant 0.000000e+00 : f32
    %6 = vector.broadcast %cst_3 : f32 to vector<2x1xf32>
    %cst_4 = arith.constant 0.000000e+00 : f32
    %7 = vector.broadcast %cst_4 : f32 to vector<2x1xf32>
    %cst_5 = arith.constant 0.000000e+00 : f32
    %8 = vector.broadcast %cst_5 : f32 to vector<2x1xf32>
    %cst_6 = arith.constant 0.000000e+00 : f32
    %9 = vector.broadcast %cst_6 : f32 to vector<2x1xf32>
    %cst_7 = arith.constant 0.000000e+00 : f32
    %10 = vector.broadcast %cst_7 : f32 to vector<2x1xf32>
    %cst_8 = arith.constant 0.000000e+00 : f32
    %11 = vector.broadcast %cst_8 : f32 to vector<2x1xf32>
    %cst_9 = arith.constant 0.000000e+00 : f32
    %12 = vector.broadcast %cst_9 : f32 to vector<2x1xf32>
    %c0_i32_10 = arith.constant 0 : i32
    %c384_i32 = arith.constant 384 : i32
    %13 = arith.muli %c0_i32_10, %c384_i32 : i32
    %14 = tpu.assume_multiple %13, 128 : i32
    %c0 = arith.constant 0 : index
    %15 = arith.index_cast %14 : i32 to index
    %16 = vector.load %arg1[%c0, %15] : memref<2x384xf32, #tpu.memory_space<vmem>>, vector<2x384xf32>
    %c0_11 = arith.constant 0 : index
    %17 = arith.index_cast %14 : i32 to index
    %18 = vector.load %arg2[%c0_11, %17] : memref<2x384xf32, #tpu.memory_space<vmem>>, vector<2x384xf32>
    %cst_12 = arith.constant dense<0.000000e+00> : vector<2xf32>
    %19 = vector.multi_reduction <add>, %16, %cst_12 [1] : vector<2x384xf32> to vector<2xf32>
    %20 = vector.shape_cast %19 : vector<2xf32> to vector<2x1xf32>
    %21 = arith.addf %3, %20 : vector<2x1xf32>
    %cst_13 = arith.constant dense<0.000000e+00> : vector<2xf32>
    %22 = vector.multi_reduction <add>, %18, %cst_13 [1] : vector<2x384xf32> to vector<2xf32>
    %23 = vector.shape_cast %22 : vector<2xf32> to vector<2x1xf32>
    %24 = arith.addf %4, %23 : vector<2x1xf32>
    %25 = arith.mulf %16, %16 : vector<2x384xf32>
    %cst_14 = arith.constant dense<0.000000e+00> : vector<2xf32>
    %26 = vector.multi_reduction <add>, %25, %cst_14 [1] : vector<2x384xf32> to vector<2xf32>
    %27 = vector.shape_cast %26 : vector<2xf32> to vector<2x1xf32>
    %28 = arith.addf %5, %27 : vector<2x1xf32>
    %29 = arith.mulf %18, %18 : vector<2x384xf32>
    %cst_15 = arith.constant dense<0.000000e+00> : vector<2xf32>
    %30 = vector.multi_reduction <add>, %29, %cst_15 [1] : vector<2x384xf32> to vector<2xf32>
    %31 = vector.shape_cast %30 : vector<2xf32> to vector<2x1xf32>
    %32 = arith.addf %6, %31 : vector<2x1xf32>
    %33 = arith.mulf %16, %18 : vector<2x384xf32>
    %cst_16 = arith.constant dense<0.000000e+00> : vector<2xf32>
    %34 = vector.multi_reduction <add>, %33, %cst_16 [1] : vector<2x384xf32> to vector<2xf32>
    %35 = vector.shape_cast %34 : vector<2xf32> to vector<2x1xf32>
    %36 = arith.addf %7, %35 : vector<2x1xf32>
    %c0_17 = arith.constant 0 : index
    %37 = arith.index_cast %14 : i32 to index
    %38 = vector.load %arg3[%c0_17, %37] : memref<2x384xf32, #tpu.memory_space<vmem>>, vector<2x384xf32>
    %c0_18 = arith.constant 0 : index
    %39 = arith.index_cast %14 : i32 to index
    %40 = vector.load %arg4[%c0_18, %39] : memref<2x384xf32, #tpu.memory_space<vmem>>, vector<2x384xf32>
    %cst_19 = arith.constant dense<0.000000e+00> : vector<2xf32>
    %41 = vector.multi_reduction <add>, %38, %cst_19 [1] : vector<2x384xf32> to vector<2xf32>
    %42 = vector.shape_cast %41 : vector<2xf32> to vector<2x1xf32>
    %43 = arith.addf %8, %42 : vector<2x1xf32>
    %cst_20 = arith.constant dense<0.000000e+00> : vector<2xf32>
    %44 = vector.multi_reduction <add>, %40, %cst_20 [1] : vector<2x384xf32> to vector<2xf32>
    %45 = vector.shape_cast %44 : vector<2xf32> to vector<2x1xf32>
    %46 = arith.addf %9, %45 : vector<2x1xf32>
    %47 = arith.mulf %38, %38 : vector<2x384xf32>
    %cst_21 = arith.constant dense<0.000000e+00> : vector<2xf32>
    %48 = vector.multi_reduction <add>, %47, %cst_21 [1] : vector<2x384xf32> to vector<2xf32>
    %49 = vector.shape_cast %48 : vector<2xf32> to vector<2x1xf32>
    %50 = arith.addf %10, %49 : vector<2x1xf32>
    %51 = arith.mulf %40, %40 : vector<2x384xf32>
    %cst_22 = arith.constant dense<0.000000e+00> : vector<2xf32>
    %52 = vector.multi_reduction <add>, %51, %cst_22 [1] : vector<2x384xf32> to vector<2xf32>
    %53 = vector.shape_cast %52 : vector<2xf32> to vector<2x1xf32>
    %54 = arith.addf %11, %53 : vector<2x1xf32>
    %55 = arith.mulf %38, %40 : vector<2x384xf32>
    %cst_23 = arith.constant dense<0.000000e+00> : vector<2xf32>
    %56 = vector.multi_reduction <add>, %55, %cst_23 [1] : vector<2x384xf32> to vector<2xf32>
    %57 = vector.shape_cast %56 : vector<2xf32> to vector<2x1xf32>
    %58 = arith.addf %12, %57 : vector<2x1xf32>
    %c1_i32 = arith.constant 1 : i32
    %c0_24 = arith.constant 0 : index
    %c0_25 = arith.constant 0 : index
    %c0_26 = arith.constant 0 : index
    %59 = vector.load %arg6[%c0_24, %c0_25, %c0_26] : memref<10x2x1xf32, #tpu.memory_space<vmem>>, vector<1x2x1xf32>
    %60 = vector.shape_cast %59 : vector<1x2x1xf32> to vector<2x1xf32>
    %61 = arith.addf %60, %21 : vector<2x1xf32>
    %c0_27 = arith.constant 0 : index
    %c0_28 = arith.constant 0 : index
    %c0_29 = arith.constant 0 : index
    %62 = vector.load %arg6[%c0_27, %c0_28, %c0_29] : memref<10x2x1xf32, #tpu.memory_space<vmem>>, vector<1x2x1xf32>
    %63 = vector.shape_cast %62 : vector<1x2x1xf32> to vector<2x1xf32>
    %64 = vector.shape_cast %61 : vector<2x1xf32> to vector<1x2x1xf32>
    tpu.vector_store %arg6[%c0_27, %c0_28, %c0_29], %64 {strides = array<i32>} : memref<10x2x1xf32, #tpu.memory_space<vmem>>, vector<1x2x1xf32>,
    %c1 = arith.constant 1 : index
    %c0_30 = arith.constant 0 : index
    %c0_31 = arith.constant 0 : index
    %65 = vector.load %arg6[%c1, %c0_30, %c0_31] : memref<10x2x1xf32, #tpu.memory_space<vmem>>, vector<1x2x1xf32>
    %66 = vector.shape_cast %65 : vector<1x2x1xf32> to vector<2x1xf32>
    %67 = arith.addf %66, %24 : vector<2x1xf32>
    %c1_32 = arith.constant 1 : index
    %c0_33 = arith.constant 0 : index
    %c0_34 = arith.constant 0 : index
    %68 = vector.load %arg6[%c1_32, %c0_33, %c0_34] : memref<10x2x1xf32, #tpu.memory_space<vmem>>, vector<1x2x1xf32>
    %69 = vector.shape_cast %68 : vector<1x2x1xf32> to vector<2x1xf32>
    %70 = vector.shape_cast %67 : vector<2x1xf32> to vector<1x2x1xf32>
    tpu.vector_store %arg6[%c1_32, %c0_33, %c0_34], %70 {strides = array<i32>} : memref<10x2x1xf32, #tpu.memory_space<vmem>>, vector<1x2x1xf32>,
    %c2 = arith.constant 2 : index
    %c0_35 = arith.constant 0 : index
    %c0_36 = arith.constant 0 : index
    %71 = vector.load %arg6[%c2, %c0_35, %c0_36] : memref<10x2x1xf32, #tpu.memory_space<vmem>>, vector<1x2x1xf32>
    %72 = vector.shape_cast %71 : vector<1x2x1xf32> to vector<2x1xf32>
    %73 = arith.addf %72, %28 : vector<2x1xf32>
    %c2_37 = arith.constant 2 : index
    %c0_38 = arith.constant 0 : index
    %c0_39 = arith.constant 0 : index
    %74 = vector.load %arg6[%c2_37, %c0_38, %c0_39] : memref<10x2x1xf32, #tpu.memory_space<vmem>>, vector<1x2x1xf32>
    %75 = vector.shape_cast %74 : vector<1x2x1xf32> to vector<2x1xf32>
    %76 = vector.shape_cast %73 : vector<2x1xf32> to vector<1x2x1xf32>
    tpu.vector_store %arg6[%c2_37, %c0_38, %c0_39], %76 {strides = array<i32>} : memref<10x2x1xf32, #tpu.memory_space<vmem>>, vector<1x2x1xf32>,
    %c3 = arith.constant 3 : index
    %c0_40 = arith.constant 0 : index
    %c0_41 = arith.constant 0 : index
    %77 = vector.load %arg6[%c3, %c0_40, %c0_41] : memref<10x2x1xf32, #tpu.memory_space<vmem>>, vector<1x2x1xf32>
    %78 = vector.shape_cast %77 : vector<1x2x1xf32> to vector<2x1xf32>
    %79 = arith.addf %78, %32 : vector<2x1xf32>
    %c3_42 = arith.constant 3 : index
    %c0_43 = arith.constant 0 : index
    %c0_44 = arith.constant 0 : index
    %80 = vector.load %arg6[%c3_42, %c0_43, %c0_44] : memref<10x2x1xf32, #tpu.memory_space<vmem>>, vector<1x2x1xf32>
    %81 = vector.shape_cast %80 : vector<1x2x1xf32> to vector<2x1xf32>
    %82 = vector.shape_cast %79 : vector<2x1xf32> to vector<1x2x1xf32>
    tpu.vector_store %arg6[%c3_42, %c0_43, %c0_44], %82 {strides = array<i32>} : memref<10x2x1xf32, #tpu.memory_space<vmem>>, vector<1x2x1xf32>,
    %c4 = arith.constant 4 : index
    %c0_45 = arith.constant 0 : index
    %c0_46 = arith.constant 0 : index
    %83 = vector.load %arg6[%c4, %c0_45, %c0_46] : memref<10x2x1xf32, #tpu.memory_space<vmem>>, vector<1x2x1xf32>
    %84 = vector.shape_cast %83 : vector<1x2x1xf32> to vector<2x1xf32>
    %85 = arith.addf %84, %36 : vector<2x1xf32>
    %c4_47 = arith.constant 4 : index
    %c0_48 = arith.constant 0 : index
    %c0_49 = arith.constant 0 : index
    %86 = vector.load %arg6[%c4_47, %c0_48, %c0_49] : memref<10x2x1xf32, #tpu.memory_space<vmem>>, vector<1x2x1xf32>
    %87 = vector.shape_cast %86 : vector<1x2x1xf32> to vector<2x1xf32>
    %88 = vector.shape_cast %85 : vector<2x1xf32> to vector<1x2x1xf32>
    tpu.vector_store %arg6[%c4_47, %c0_48, %c0_49], %88 {strides = array<i32>} : memref<10x2x1xf32, #tpu.memory_space<vmem>>, vector<1x2x1xf32>,
    %c5 = arith.constant 5 : index
    %c0_50 = arith.constant 0 : index
    %c0_51 = arith.constant 0 : index
    %89 = vector.load %arg6[%c5, %c0_50, %c0_51] : memref<10x2x1xf32, #tpu.memory_space<vmem>>, vector<1x2x1xf32>
    %90 = vector.shape_cast %89 : vector<1x2x1xf32> to vector<2x1xf32>
    %91 = arith.addf %90, %43 : vector<2x1xf32>
    %c5_52 = arith.constant 5 : index
    %c0_53 = arith.constant 0 : index
    %c0_54 = arith.constant 0 : index
    %92 = vector.load %arg6[%c5_52, %c0_53, %c0_54] : memref<10x2x1xf32, #tpu.memory_space<vmem>>, vector<1x2x1xf32>
    %93 = vector.shape_cast %92 : vector<1x2x1xf32> to vector<2x1xf32>
    %94 = vector.shape_cast %91 : vector<2x1xf32> to vector<1x2x1xf32>
    tpu.vector_store %arg6[%c5_52, %c0_53, %c0_54], %94 {strides = array<i32>} : memref<10x2x1xf32, #tpu.memory_space<vmem>>, vector<1x2x1xf32>,
    %c6 = arith.constant 6 : index
    %c0_55 = arith.constant 0 : index
    %c0_56 = arith.constant 0 : index
    %95 = vector.load %arg6[%c6, %c0_55, %c0_56] : memref<10x2x1xf32, #tpu.memory_space<vmem>>, vector<1x2x1xf32>
    %96 = vector.shape_cast %95 : vector<1x2x1xf32> to vector<2x1xf32>
    %97 = arith.addf %96, %46 : vector<2x1xf32>
    %c6_57 = arith.constant 6 : index
    %c0_58 = arith.constant 0 : index
    %c0_59 = arith.constant 0 : index
    %98 = vector.load %arg6[%c6_57, %c0_58, %c0_59] : memref<10x2x1xf32, #tpu.memory_space<vmem>>, vector<1x2x1xf32>
    %99 = vector.shape_cast %98 : vector<1x2x1xf32> to vector<2x1xf32>
    %100 = vector.shape_cast %97 : vector<2x1xf32> to vector<1x2x1xf32>
    tpu.vector_store %arg6[%c6_57, %c0_58, %c0_59], %100 {strides = array<i32>} : memref<10x2x1xf32, #tpu.memory_space<vmem>>, vector<1x2x1xf32>,
    %c7 = arith.constant 7 : index
    %c0_60 = arith.constant 0 : index
    %c0_61 = arith.constant 0 : index
    %101 = vector.load %arg6[%c7, %c0_60, %c0_61] : memref<10x2x1xf32, #tpu.memory_space<vmem>>, vector<1x2x1xf32>
    %102 = vector.shape_cast %101 : vector<1x2x1xf32> to vector<2x1xf32>
    %103 = arith.addf %102, %50 : vector<2x1xf32>
    %c7_62 = arith.constant 7 : index
    %c0_63 = arith.constant 0 : index
    %c0_64 = arith.constant 0 : index
    %104 = vector.load %arg6[%c7_62, %c0_63, %c0_64] : memref<10x2x1xf32, #tpu.memory_space<vmem>>, vector<1x2x1xf32>
    %105 = vector.shape_cast %104 : vector<1x2x1xf32> to vector<2x1xf32>
    %106 = vector.shape_cast %103 : vector<2x1xf32> to vector<1x2x1xf32>
    tpu.vector_store %arg6[%c7_62, %c0_63, %c0_64], %106 {strides = array<i32>} : memref<10x2x1xf32, #tpu.memory_space<vmem>>, vector<1x2x1xf32>,
    %c8 = arith.constant 8 : index
    %c0_65 = arith.constant 0 : index
    %c0_66 = arith.constant 0 : index
    %107 = vector.load %arg6[%c8, %c0_65, %c0_66] : memref<10x2x1xf32, #tpu.memory_space<vmem>>, vector<1x2x1xf32>
    %108 = vector.shape_cast %107 : vector<1x2x1xf32> to vector<2x1xf32>
    %109 = arith.addf %108, %54 : vector<2x1xf32>
    %c8_67 = arith.constant 8 : index
    %c0_68 = arith.constant 0 : index
    %c0_69 = arith.constant 0 : index
    %110 = vector.load %arg6[%c8_67, %c0_68, %c0_69] : memref<10x2x1xf32, #tpu.memory_space<vmem>>, vector<1x2x1xf32>
    %111 = vector.shape_cast %110 : vector<1x2x1xf32> to vector<2x1xf32>
    %112 = vector.shape_cast %109 : vector<2x1xf32> to vector<1x2x1xf32>
    tpu.vector_store %arg6[%c8_67, %c0_68, %c0_69], %112 {strides = array<i32>} : memref<10x2x1xf32, #tpu.memory_space<vmem>>, vector<1x2x1xf32>,
    %c9 = arith.constant 9 : index
    %c0_70 = arith.constant 0 : index
    %c0_71 = arith.constant 0 : index
    %113 = vector.load %arg6[%c9, %c0_70, %c0_71] : memref<10x2x1xf32, #tpu.memory_space<vmem>>, vector<1x2x1xf32>
    %114 = vector.shape_cast %113 : vector<1x2x1xf32> to vector<2x1xf32>
    %115 = arith.addf %114, %58 : vector<2x1xf32>
    %c9_72 = arith.constant 9 : index
    %c0_73 = arith.constant 0 : index
    %c0_74 = arith.constant 0 : index
    %116 = vector.load %arg6[%c9_72, %c0_73, %c0_74] : memref<10x2x1xf32, #tpu.memory_space<vmem>>, vector<1x2x1xf32>
    %117 = vector.shape_cast %116 : vector<1x2x1xf32> to vector<2x1xf32>
    %118 = vector.shape_cast %115 : vector<2x1xf32> to vector<1x2x1xf32>
    tpu.vector_store %arg6[%c9_72, %c0_73, %c0_74], %118 {strides = array<i32>} : memref<10x2x1xf32, #tpu.memory_space<vmem>>, vector<1x2x1xf32>,
    %c0_i32_75 = arith.constant 0 : i32
    %119 = arith.cmpi eq, %arg0, %c0_i32_75 : i32
    %120 = arith.extui %119 : i1 to i32
    %c0_i32_76 = arith.constant 0 : i32
    %121 = arith.cmpi ne, %120, %c0_i32_76 : i32
    scf.if %121 {
      %c0_77 = arith.constant 0 : index
      %c0_78 = arith.constant 0 : index
      %c0_79 = arith.constant 0 : index
      %122 = vector.load %arg6[%c0_77, %c0_78, %c0_79] : memref<10x2x1xf32, #tpu.memory_space<vmem>>, vector<1x2x1xf32>
      %123 = vector.shape_cast %122 : vector<1x2x1xf32> to vector<2x1xf32>
      %c1_80 = arith.constant 1 : index
      %c0_81 = arith.constant 0 : index
      %c0_82 = arith.constant 0 : index
      %124 = vector.load %arg6[%c1_80, %c0_81, %c0_82] : memref<10x2x1xf32, #tpu.memory_space<vmem>>, vector<1x2x1xf32>
      %125 = vector.shape_cast %124 : vector<1x2x1xf32> to vector<2x1xf32>
      %c2_83 = arith.constant 2 : index
      %c0_84 = arith.constant 0 : index
      %c0_85 = arith.constant 0 : index
      %126 = vector.load %arg6[%c2_83, %c0_84, %c0_85] : memref<10x2x1xf32, #tpu.memory_space<vmem>>, vector<1x2x1xf32>
      %127 = vector.shape_cast %126 : vector<1x2x1xf32> to vector<2x1xf32>
      %c3_86 = arith.constant 3 : index
      %c0_87 = arith.constant 0 : index
      %c0_88 = arith.constant 0 : index
      %128 = vector.load %arg6[%c3_86, %c0_87, %c0_88] : memref<10x2x1xf32, #tpu.memory_space<vmem>>, vector<1x2x1xf32>
      %129 = vector.shape_cast %128 : vector<1x2x1xf32> to vector<2x1xf32>
      %c4_89 = arith.constant 4 : index
      %c0_90 = arith.constant 0 : index
      %c0_91 = arith.constant 0 : index
      %130 = vector.load %arg6[%c4_89, %c0_90, %c0_91] : memref<10x2x1xf32, #tpu.memory_space<vmem>>, vector<1x2x1xf32>
      %131 = vector.shape_cast %130 : vector<1x2x1xf32> to vector<2x1xf32>
      %cst_92 = arith.constant 3.840000e+02 : f32
      %132 = vector.broadcast %cst_92 : f32 to vector<2x1xf32>
      %133 = arith.divf %123, %132 : vector<2x1xf32>
      %cst_93 = arith.constant 3.840000e+02 : f32
      %134 = vector.broadcast %cst_93 : f32 to vector<2x1xf32>
      %135 = arith.divf %125, %134 : vector<2x1xf32>
      %136 = arith.mulf %123, %133 : vector<2x1xf32>
      %137 = arith.subf %127, %136 : vector<2x1xf32>
      %cst_94 = arith.constant 0.000000e+00 : f32
      %138 = vector.broadcast %cst_94 : f32 to vector<2x1xf32>
      %139 = arith.maximumf %137, %138 : vector<2x1xf32>
      %cst_95 = arith.constant 3.840000e+02 : f32
      %cst_96 = arith.constant 1.000000e+00 : f32
      %140 = arith.subf %cst_95, %cst_96 : f32
      %141 = vector.broadcast %140 : f32 to vector<2x1xf32>
      %142 = arith.divf %139, %141 : vector<2x1xf32>
      %143 = math.sqrt %142 : vector<2x1xf32>
      %144 = arith.mulf %125, %135 : vector<2x1xf32>
      %145 = arith.subf %129, %144 : vector<2x1xf32>
      %cst_97 = arith.constant 0.000000e+00 : f32
      %146 = vector.broadcast %cst_97 : f32 to vector<2x1xf32>
      %147 = arith.maximumf %145, %146 : vector<2x1xf32>
      %cst_98 = arith.constant 3.840000e+02 : f32
      %cst_99 = arith.constant 1.000000e+00 : f32
      %148 = arith.subf %cst_98, %cst_99 : f32
      %149 = vector.broadcast %148 : f32 to vector<2x1xf32>
      %150 = arith.divf %147, %149 : vector<2x1xf32>
      %151 = math.sqrt %150 : vector<2x1xf32>
      %cst_100 = arith.constant 0.000000e+00 : f32
      %152 = vector.broadcast %cst_100 : f32 to vector<2x1xf32>
      %153 = arith.cmpf oeq, %143, %152 : vector<2x1xf32>
      %cst_101 = arith.constant 9.99999997E-7 : f32
      %154 = vector.broadcast %cst_101 : f32 to vector<2x1xf32>
      %155 = arith.select %153, %154, %143 : vector<2x1xi1>, vector<2x1xf32>
      %cst_102 = arith.constant 0.000000e+00 : f32
      %156 = vector.broadcast %cst_102 : f32 to vector<2x1xf32>
      %157 = arith.cmpf oeq, %151, %156 : vector<2x1xf32>
      %cst_103 = arith.constant 9.99999997E-7 : f32
      %158 = vector.broadcast %cst_103 : f32 to vector<2x1xf32>
      %159 = arith.select %157, %158, %151 : vector<2x1xi1>, vector<2x1xf32>
      %160 = arith.mulf %155, %159 : vector<2x1xf32>
      %cst_104 = arith.constant 9.99999997E-7 : f32
      %161 = vector.broadcast %cst_104 : f32 to vector<2x1xf32>
      %162 = arith.addf %160, %161 : vector<2x1xf32>
      %163 = arith.mulf %155, %155 : vector<2x1xf32>
      %164 = arith.mulf %159, %159 : vector<2x1xf32>
      %165 = arith.addf %163, %164 : vector<2x1xf32>
      %166 = arith.subf %133, %135 : vector<2x1xf32>
      %167 = arith.mulf %166, %166 : vector<2x1xf32>
      %168 = arith.addf %165, %167 : vector<2x1xf32>
      %cst_105 = arith.constant 9.99999997E-7 : f32
      %169 = vector.broadcast %cst_105 : f32 to vector<2x1xf32>
      %170 = arith.addf %168, %169 : vector<2x1xf32>
      %171 = arith.mulf %162, %170 : vector<2x1xf32>
      %cst_106 = arith.constant 2.000000e+00 : f32
      %172 = vector.broadcast %cst_106 : f32 to vector<2x1xf32>
      %173 = arith.mulf %172, %155 : vector<2x1xf32>
      %174 = arith.mulf %173, %159 : vector<2x1xf32>
      %175 = arith.divf %174, %171 : vector<2x1xf32>
      %176 = arith.mulf %123, %125 : vector<2x1xf32>
      %cst_107 = arith.constant 3.840000e+02 : f32
      %177 = vector.broadcast %cst_107 : f32 to vector<2x1xf32>
      %178 = arith.divf %176, %177 : vector<2x1xf32>
      %179 = arith.subf %131, %178 : vector<2x1xf32>
      %cst_108 = arith.constant 3.840000e+02 : f32
      %180 = vector.broadcast %cst_108 : f32 to vector<2x1xf32>
      %181 = arith.divf %179, %180 : vector<2x1xf32>
      %182 = arith.addf %127, %129 : vector<2x1xf32>
      %cst_109 = arith.constant 2.000000e+00 : f32
      %183 = vector.broadcast %cst_109 : f32 to vector<2x1xf32>
      %184 = arith.mulf %183, %131 : vector<2x1xf32>
      %185 = arith.subf %182, %184 : vector<2x1xf32>
      %186 = vector.shape_cast %175 : vector<2x1xf32> to vector<2x1xf32>
      %187 = vector.broadcast %186 : vector<2x1xf32> to vector<2x128xf32>
      %c0_110 = arith.constant 0 : index
      %c0_111 = arith.constant 0 : index
      %c0_112 = arith.constant 0 : index
      %188 = vector.load %arg5[%c0_110, %c0_111, %c0_112] : memref<6x2x128xf32, #tpu.memory_space<vmem>>, vector<1x2x128xf32>
      %189 = vector.shape_cast %188 : vector<1x2x128xf32> to vector<2x128xf32>
      %190 = vector.shape_cast %187 : vector<2x128xf32> to vector<1x2x128xf32>
      tpu.vector_store %arg5[%c0_110, %c0_111, %c0_112], %190 {strides = array<i32>} : memref<6x2x128xf32, #tpu.memory_space<vmem>>, vector<1x2x128xf32>,
      %191 = vector.shape_cast %181 : vector<2x1xf32> to vector<2x1xf32>
      %192 = vector.broadcast %191 : vector<2x1xf32> to vector<2x128xf32>
      %c1_113 = arith.constant 1 : index
      %c0_114 = arith.constant 0 : index
      %c0_115 = arith.constant 0 : index
      %193 = vector.load %arg5[%c1_113, %c0_114, %c0_115] : memref<6x2x128xf32, #tpu.memory_space<vmem>>, vector<1x2x128xf32>
      %194 = vector.shape_cast %193 : vector<1x2x128xf32> to vector<2x128xf32>
      %195 = vector.shape_cast %192 : vector<2x128xf32> to vector<1x2x128xf32>
      tpu.vector_store %arg5[%c1_113, %c0_114, %c0_115], %195 {strides = array<i32>} : memref<6x2x128xf32, #tpu.memory_space<vmem>>, vector<1x2x128xf32>,
      %196 = vector.shape_cast %185 : vector<2x1xf32> to vector<2x1xf32>
      %197 = vector.broadcast %196 : vector<2x1xf32> to vector<2x128xf32>
      %c2_116 = arith.constant 2 : index
      %c0_117 = arith.constant 0 : index
      %c0_118 = arith.constant 0 : index
      %198 = vector.load %arg5[%c2_116, %c0_117, %c0_118] : memref<6x2x128xf32, #tpu.memory_space<vmem>>, vector<1x2x128xf32>
      %199 = vector.shape_cast %198 : vector<1x2x128xf32> to vector<2x128xf32>
      %200 = vector.shape_cast %197 : vector<2x128xf32> to vector<1x2x128xf32>
      tpu.vector_store %arg5[%c2_116, %c0_117, %c0_118], %200 {strides = array<i32>} : memref<6x2x128xf32, #tpu.memory_space<vmem>>, vector<1x2x128xf32>,
      %c5_119 = arith.constant 5 : index
      %c0_120 = arith.constant 0 : index
      %c0_121 = arith.constant 0 : index
      %201 = vector.load %arg6[%c5_119, %c0_120, %c0_121] : memref<10x2x1xf32, #tpu.memory_space<vmem>>, vector<1x2x1xf32>
      %202 = vector.shape_cast %201 : vector<1x2x1xf32> to vector<2x1xf32>
      %c6_122 = arith.constant 6 : index
      %c0_123 = arith.constant 0 : index
      %c0_124 = arith.constant 0 : index
      %203 = vector.load %arg6[%c6_122, %c0_123, %c0_124] : memref<10x2x1xf32, #tpu.memory_space<vmem>>, vector<1x2x1xf32>
      %204 = vector.shape_cast %203 : vector<1x2x1xf32> to vector<2x1xf32>
      %c7_125 = arith.constant 7 : index
      %c0_126 = arith.constant 0 : index
      %c0_127 = arith.constant 0 : index
      %205 = vector.load %arg6[%c7_125, %c0_126, %c0_127] : memref<10x2x1xf32, #tpu.memory_space<vmem>>, vector<1x2x1xf32>
      %206 = vector.shape_cast %205 : vector<1x2x1xf32> to vector<2x1xf32>
      %c8_128 = arith.constant 8 : index
      %c0_129 = arith.constant 0 : index
      %c0_130 = arith.constant 0 : index
      %207 = vector.load %arg6[%c8_128, %c0_129, %c0_130] : memref<10x2x1xf32, #tpu.memory_space<vmem>>, vector<1x2x1xf32>
      %208 = vector.shape_cast %207 : vector<1x2x1xf32> to vector<2x1xf32>
      %c9_131 = arith.constant 9 : index
      %c0_132 = arith.constant 0 : index
      %c0_133 = arith.constant 0 : index
      %209 = vector.load %arg6[%c9_131, %c0_132, %c0_133] : memref<10x2x1xf32, #tpu.memory_space<vmem>>, vector<1x2x1xf32>
      %210 = vector.shape_cast %209 : vector<1x2x1xf32> to vector<2x1xf32>
      %cst_134 = arith.constant 3.840000e+02 : f32
      %211 = vector.broadcast %cst_134 : f32 to vector<2x1xf32>
      %212 = arith.divf %202, %211 : vector<2x1xf32>
      %cst_135 = arith.constant 3.840000e+02 : f32
      %213 = vector.broadcast %cst_135 : f32 to vector<2x1xf32>
      %214 = arith.divf %204, %213 : vector<2x1xf32>
      %215 = arith.mulf %202, %212 : vector<2x1xf32>
      %216 = arith.subf %206, %215 : vector<2x1xf32>
      %cst_136 = arith.constant 0.000000e+00 : f32
      %217 = vector.broadcast %cst_136 : f32 to vector<2x1xf32>
      %218 = arith.maximumf %216, %217 : vector<2x1xf32>
      %cst_137 = arith.constant 3.840000e+02 : f32
      %cst_138 = arith.constant 1.000000e+00 : f32
      %219 = arith.subf %cst_137, %cst_138 : f32
      %220 = vector.broadcast %219 : f32 to vector<2x1xf32>
      %221 = arith.divf %218, %220 : vector<2x1xf32>
      %222 = math.sqrt %221 : vector<2x1xf32>
      %223 = arith.mulf %204, %214 : vector<2x1xf32>
      %224 = arith.subf %208, %223 : vector<2x1xf32>
      %cst_139 = arith.constant 0.000000e+00 : f32
      %225 = vector.broadcast %cst_139 : f32 to vector<2x1xf32>
      %226 = arith.maximumf %224, %225 : vector<2x1xf32>
      %cst_140 = arith.constant 3.840000e+02 : f32
      %cst_141 = arith.constant 1.000000e+00 : f32
      %227 = arith.subf %cst_140, %cst_141 : f32
      %228 = vector.broadcast %227 : f32 to vector<2x1xf32>
      %229 = arith.divf %226, %228 : vector<2x1xf32>
      %230 = math.sqrt %229 : vector<2x1xf32>
      %cst_142 = arith.constant 0.000000e+00 : f32
      %231 = vector.broadcast %cst_142 : f32 to vector<2x1xf32>
      %232 = arith.cmpf oeq, %222, %231 : vector<2x1xf32>
      %cst_143 = arith.constant 9.99999997E-7 : f32
      %233 = vector.broadcast %cst_143 : f32 to vector<2x1xf32>
      %234 = arith.select %232, %233, %222 : vector<2x1xi1>, vector<2x1xf32>
      %cst_144 = arith.constant 0.000000e+00 : f32
      %235 = vector.broadcast %cst_144 : f32 to vector<2x1xf32>
      %236 = arith.cmpf oeq, %230, %235 : vector<2x1xf32>
      %cst_145 = arith.constant 9.99999997E-7 : f32
      %237 = vector.broadcast %cst_145 : f32 to vector<2x1xf32>
      %238 = arith.select %236, %237, %230 : vector<2x1xi1>, vector<2x1xf32>
      %239 = arith.mulf %234, %238 : vector<2x1xf32>
      %cst_146 = arith.constant 9.99999997E-7 : f32
      %240 = vector.broadcast %cst_146 : f32 to vector<2x1xf32>
      %241 = arith.addf %239, %240 : vector<2x1xf32>
      %242 = arith.mulf %234, %234 : vector<2x1xf32>
      %243 = arith.mulf %238, %238 : vector<2x1xf32>
      %244 = arith.addf %242, %243 : vector<2x1xf32>
      %245 = arith.subf %212, %214 : vector<2x1xf32>
      %246 = arith.mulf %245, %245 : vector<2x1xf32>
      %247 = arith.addf %244, %246 : vector<2x1xf32>
      %cst_147 = arith.constant 9.99999997E-7 : f32
      %248 = vector.broadcast %cst_147 : f32 to vector<2x1xf32>
      %249 = arith.addf %247, %248 : vector<2x1xf32>
      %250 = arith.mulf %241, %249 : vector<2x1xf32>
      %cst_148 = arith.constant 2.000000e+00 : f32
      %251 = vector.broadcast %cst_148 : f32 to vector<2x1xf32>
      %252 = arith.mulf %251, %234 : vector<2x1xf32>
      %253 = arith.mulf %252, %238 : vector<2x1xf32>
      %254 = arith.divf %253, %250 : vector<2x1xf32>
      %255 = arith.mulf %202, %204 : vector<2x1xf32>
      %cst_149 = arith.constant 3.840000e+02 : f32
      %256 = vector.broadcast %cst_149 : f32 to vector<2x1xf32>
      %257 = arith.divf %255, %256 : vector<2x1xf32>
      %258 = arith.subf %210, %257 : vector<2x1xf32>
      %cst_150 = arith.constant 3.840000e+02 : f32
      %259 = vector.broadcast %cst_150 : f32 to vector<2x1xf32>
      %260 = arith.divf %258, %259 : vector<2x1xf32>
      %261 = arith.addf %206, %208 : vector<2x1xf32>
      %cst_151 = arith.constant 2.000000e+00 : f32
      %262 = vector.broadcast %cst_151 : f32 to vector<2x1xf32>
      %263 = arith.mulf %262, %210 : vector<2x1xf32>
      %264 = arith.subf %261, %263 : vector<2x1xf32>
      %265 = vector.shape_cast %254 : vector<2x1xf32> to vector<2x1xf32>
      %266 = vector.broadcast %265 : vector<2x1xf32> to vector<2x128xf32>
      %c3_152 = arith.constant 3 : index
      %c0_153 = arith.constant 0 : index
      %c0_154 = arith.constant 0 : index
      %267 = vector.load %arg5[%c3_152, %c0_153, %c0_154] : memref<6x2x128xf32, #tpu.memory_space<vmem>>, vector<1x2x128xf32>
      %268 = vector.shape_cast %267 : vector<1x2x128xf32> to vector<2x128xf32>
      %269 = vector.shape_cast %266 : vector<2x128xf32> to vector<1x2x128xf32>
      tpu.vector_store %arg5[%c3_152, %c0_153, %c0_154], %269 {strides = array<i32>} : memref<6x2x128xf32, #tpu.memory_space<vmem>>, vector<1x2x128xf32>,
      %270 = vector.shape_cast %260 : vector<2x1xf32> to vector<2x1xf32>
      %271 = vector.broadcast %270 : vector<2x1xf32> to vector<2x128xf32>
      %c4_155 = arith.constant 4 : index
      %c0_156 = arith.constant 0 : index
      %c0_157 = arith.constant 0 : index
      %272 = vector.load %arg5[%c4_155, %c0_156, %c0_157] : memref<6x2x128xf32, #tpu.memory_space<vmem>>, vector<1x2x128xf32>
      %273 = vector.shape_cast %272 : vector<1x2x128xf32> to vector<2x128xf32>
      %274 = vector.shape_cast %271 : vector<2x128xf32> to vector<1x2x128xf32>
      tpu.vector_store %arg5[%c4_155, %c0_156, %c0_157], %274 {strides = array<i32>} : memref<6x2x128xf32, #tpu.memory_space<vmem>>, vector<1x2x128xf32>,
      %275 = vector.shape_cast %264 : vector<2x1xf32> to vector<2x1xf32>
      %276 = vector.broadcast %275 : vector<2x1xf32> to vector<2x128xf32>
      %c5_158 = arith.constant 5 : index
      %c0_159 = arith.constant 0 : index
      %c0_160 = arith.constant 0 : index
      %277 = vector.load %arg5[%c5_158, %c0_159, %c0_160] : memref<6x2x128xf32, #tpu.memory_space<vmem>>, vector<1x2x128xf32>
      %278 = vector.shape_cast %277 : vector<1x2x128xf32> to vector<2x128xf32>
      %279 = vector.shape_cast %276 : vector<2x128xf32> to vector<1x2x128xf32>
      tpu.vector_store %arg5[%c5_158, %c0_159, %c0_160], %279 {strides = array<i32>} : memref<6x2x128xf32, #tpu.memory_space<vmem>>, vector<1x2x128xf32>,
    } else {
    }
    return
  }
  func.func @transform_0(%arg0: i32) -> (i32, i32) {
    %c0_i32 = arith.constant 0 : i32
    %c0_i32_0 = arith.constant 0 : i32
    return %c0_i32, %arg0 : i32, i32
  }
  func.func @transform_1(%arg0: i32) -> (i32, i32) {
    %c0_i32 = arith.constant 0 : i32
    %c0_i32_0 = arith.constant 0 : i32
    return %c0_i32, %arg0 : i32, i32
  }
  func.func @transform_2(%arg0: i32) -> (i32, i32) {
    %c0_i32 = arith.constant 0 : i32
    %c0_i32_0 = arith.constant 0 : i32
    return %c0_i32, %arg0 : i32, i32
  }
  func.func @transform_3(%arg0: i32) -> (i32, i32) {
    %c0_i32 = arith.constant 0 : i32
    %c0_i32_0 = arith.constant 0 : i32
    return %c0_i32, %arg0 : i32, i32
  }
  func.func @transform_4(%arg0: i32) -> (i32, i32, i32) {
    %c0_i32 = arith.constant 0 : i32
    %c0_i32_0 = arith.constant 0 : i32
    %c0_i32_1 = arith.constant 0 : i32
    %c0_i32_2 = arith.constant 0 : i32
    return %c0_i32, %c0_i32_0, %c0_i32_1 : i32, i32, i32
  }
}

</mosaic_0001>

<bundles_post_ra>
// kernel: ccc_loss_pallas.1
= control target key start
LH: loop header
LB: loop body
LE: loop exit
PB: predicated region body
PF: predicated region fallthrough
CT: control target
= control target key end

     0   :  { %9 = vsyncpa [#allocation4], 0  ;;  %s853_s0 = inlined_call_operand.hbm [shape: f32[2,384], index: 0, kind: input, shape index: {}]   ;;  %s854_s1 = inlined_call_operand.hbm [shape: f32[2,384], index: 1, kind: input, shape index: {}]   ;;  %s855_s2 = inlined_call_operand.vmem [shape: f32[2,384], index: 2, kind: input, shape index: {}]   ;;  %s856_s3 = inlined_call_operand.hbm [shape: f32[2,384], index: 3, kind: input, shape index: {}]   ;;  %s857_s4 = inlined_call_operand.vmem [shape: f32[6,2,128], index: 4, kind: output, shape index: {}]  }
   0x1   :  { %10 = vsyncpa [#allocation6], 0  ;;  %s657_s15 = smov [#allocation5]   ;;  %s658_s17 = smov [#allocation3]  }
   0x2   :  { %s27_s16 = sshll.u32 %s657_s15, 4  ;;  %s17_s18 = sshll.u32 %s658_s17, 4  ;;  %s28_s16 = int_to_ptr.vmem [resolvable:$true] %s27_s16  ;;  %s18_s18 = int_to_ptr.vmem [resolvable:$true] %s17_s18 }
   0x3   :  { %s587_s21 = scalar_lea.hbm %s854_s1, 96 }
   0x4   :  { %p588_p0 = scmp.ne.s32.totalorder %s854_s1, %s587_s21  ;;  %p591_p1 = scmp.lt.u32.totalorder %s587_s21, %s854_s1 }
   0x6   :  { %p593_p2 = pnand %p591_p1, %p588_p0 }
   0x8   :  { %596 = shalt.err (!%p593_p2)
}
   0x9   :  { %s597_s26 = scalar_lea.vmem %s28_s16, 96  ;;  %p602_p4 = scmp.lt.s32.totalorder %s28_s16, %s28_s16 }
   0xa   :  { %p598_p3 = scmp.ne.s32.totalorder %s28_s16, %s597_s26  ;;  %p603_p5 = scmp.lt.s32.totalorder %s597_s26, %s597_s26 }
   0xc   :  { %p604_p6 = por %p603_p5, %p602_p4 }
   0xe   :  { %p605_p7 = pnand %p604_p6, %p598_p3 }
  0x10   :  { %608 = shalt.err (!%p605_p7)
}
  0x11   :  { %30 = dma.hbm_to_vmem [thread:$0]  %s854_s1, 96, %s28_s16, [#allocation6]  }
  0x12   :  { %s609_s5 = scalar_lea.hbm %s853_s0, 96 }
  0x13   :  { %p610_p8 = scmp.ne.s32.totalorder %s853_s0, %s609_s5  ;;  %p613_p9 = scmp.lt.u32.totalorder %s609_s5, %s853_s0 }
  0x15   :  { %p615_p10 = pnand %p613_p9, %p610_p8 }
  0x17   :  { %618 = shalt.err (!%p615_p10)
}
  0x18   :  { %s619_s10 = scalar_lea.vmem %s18_s18, 96  ;;  %p624_p12 = scmp.lt.s32.totalorder %s18_s18, %s18_s18 }
  0x19   :  { %p620_p11 = scmp.ne.s32.totalorder %s18_s18, %s619_s10  ;;  %p625_p13 = scmp.lt.s32.totalorder %s619_s10, %s619_s10 }
  0x1b   :  { %p626_p0 = por %p625_p13, %p624_p12 }
  0x1d   :  { %p627_p1 = pnand %p626_p0, %p620_p11 }
  0x1f   :  { %630 = shalt.err (!%p627_p1)
}
  0x20   :  { %20 = dma.hbm_to_vmem [thread:$0]  %s853_s0, 96, %s18_s18, [#allocation4]  }
  0x21   :  { %s659_s12 = smov [#allocation7]   ;;  %s631_s16 = scalar_lea.hbm %s856_s3, 96 }
  0x22   :  { %s39_s13 = sshll.u32 %s659_s12, 4  ;;  %p632_p2 = scmp.ne.s32.totalorder %s856_s3, %s631_s16  ;;  %s40_s13 = int_to_ptr.vmem [resolvable:$true] %s39_s13 }
  0x23   :  { %p635_p3 = scmp.lt.u32.totalorder %s631_s16, %s856_s3 }
  0x25   :  { %p637_p4 = pnand %p635_p3, %p632_p2 }
  0x27   :  { %640 = shalt.err (!%p637_p4)
}
  0x28   :  { %s641_s22 = scalar_lea.vmem %s40_s13, 96  ;;  %p646_p6 = scmp.lt.s32.totalorder %s40_s13, %s40_s13 }
  0x29   :  { %p642_p5 = scmp.ne.s32.totalorder %s40_s13, %s641_s22  ;;  %p647_p7 = scmp.lt.s32.totalorder %s641_s22, %s641_s22 }
  0x2b   :  { %p648_p8 = por %p647_p7, %p646_p6 }
  0x2d   :  { %p649_p9 = pnand %p648_p8, %p642_p5 }
  0x2f   :  { %652 = shalt.err (!%p649_p9)
}
  0x30   :  { %42 = dma.hbm_to_vmem [thread:$0]  %s856_s3, 96, %s40_s13, [#allocation6]  }
  0x31   :  { %653 = dma.done.wait [#allocation4], 96  }
  0x32   :  { %654 = vsyncadd [#allocation4], 4294967200 }
  0x33   :  { %655 = dma.done.wait [#allocation6], 192  }
  0x34   :  { %656 = vsyncadd [#allocation6], 4294967104  ;;  %v74_v0 = vlaneseq  ;;  %vm56_vm0 = vcmask 1024   ;;  %v660_v1 = vmov 1983009808   ;;  %v661_v4 = vmov 0.0  }
  0x35   :  { %v72_v2 = vunpack.c.l.s4 %v660_v1  ;;  %62 = vst.msk [vmem:[#allocation2 + $0xa] sm:$0x3] %vm56_vm0, %v661_v4  ;;  %57 = vst.msk [vmem:[#allocation2] sm:$0x3] %vm56_vm0, %v661_v4  ;;  %vm89_vm1 = vcmask 1041408  }
  0x36   :  { %v75_v3 = vshrl.u32 %v74_v0, 7  ;;  %58 = vst.msk [vmem:[#allocation2 + $0x2] sm:$0x3] %vm56_vm0, %v661_v4  ;;  %59 = vst.msk [vmem:[#allocation2 + $0x4] sm:$0x3] %vm56_vm0, %v661_v4 }
  0x37   :  { %60 = vst.msk [vmem:[#allocation2 + $0x6] sm:$0x3] %vm56_vm0, %v661_v4  ;;  %61 = vst.msk [vmem:[#allocation2 + $0x8] sm:$0x3] %vm56_vm0, %v661_v4  ;;  %v73_v5 = vunpack.c.0.s8 %v72_v2  ;;  %v213_v7 = vld [vmem:[%s855_s2] sm:$0x3f] }
  0x38   :  { %63 = vst.msk [vmem:[#allocation2 + $0xc] sm:$0x3] %vm56_vm0, %v661_v4  ;;  %64 = vst.msk [vmem:[#allocation2 + $0xe] sm:$0x3] %vm56_vm0, %v661_v4  ;;  %v739_v8 = vld [vmem:[#allocation3] sm:$0x3f]  ;;  %v216_v10 = vcombine.high %v213_v7, %v213_v7  ;;  %v271_v53 = vmul.f32 %v213_v7, %v213_v7 }
  0x39   :  { %65 = vst.msk [vmem:[#allocation2 + $0x10] sm:$0x3] %vm56_vm0, %v661_v4  ;;  %66 = vst.msk [vmem:[#allocation2 + $0x12] sm:$0x3] %vm56_vm0, %v661_v4  ;;  %v734_v6 = vsub.s32 %v73_v5, %v75_v3  ;;  %v214_v9 = vld [vmem:[#allocation7] sm:$0x3f]  ;;  %v70_v12 = vcombine.high %v739_v8, %v739_v8  ;;  %v126_v42 = vmul.f32 %v739_v8, %v739_v8 }
  0x3a   :  { %v746_v14 = vld [vmem:[#allocation5] sm:$0x3f]  ;;  %v244_v15 = vcombine.high %v214_v9, %v214_v9  ;;  %v300_v52 = vmul.f32 %v214_v9, %v214_v9  ;;  %v329_v54 = vmul.f32 %v214_v9, %v213_v7  ;;  %v273_v2 = vcombine.high %v271_v53, %v271_v53 }
  0x3b   :  { %v223_v11 = vrot.slane %v213_v7, %v734_v6  ;;  %v77_v13 = vrot.slane %v739_v8, %v734_v6  ;;  %v251_v16 = vrot.slane %v214_v9, %v734_v6  ;;  %v99_v17 = vcombine.high %v746_v14, %v746_v14 }
  0x3c   :  { %v106_v18 = vrot.slane %v746_v14, %v734_v6  ;;  %v230_v19 = vrot.slane %v216_v10, %v734_v6  ;;  %v84_v22 = vrot.slane %v70_v12, %v734_v6  ;;  %v258_v25 = vrot.slane %v244_v15, %v734_v6 }
  0x3d   :  { %v231_v20 = vcombine.high %v223_v11, %v223_v11  ;;  %v235_v21 = vsel %vm89_vm1, %v223_v11, 0.0  ;;  %v85_v23 = vcombine.high %v77_v13, %v77_v13  ;;  %v90_v24 = vsel %vm89_vm1, %v77_v13, 0.0 }
  0x3e   :  { %v259_v26 = vcombine.high %v251_v16, %v251_v16  ;;  %v238_v28 = vsel %vm89_vm1, %v230_v19, 0.0  ;;  %v93_v29 = vsel %vm89_vm1, %v84_v22, 0.0  ;;  %v263_v30 = vsel %vm89_vm1, %v251_v16, 0.0 }
  0x3f   :  { %v236_v27 = vsel %vm89_vm1, %v231_v20, 0.0  ;;  %v91_v32 = vsel %vm89_vm1, %v85_v23, 0.0  ;;  %v266_v34 = vsel %vm89_vm1, %v258_v25, 0.0  ;;  %v113_v37 = vrot.slane %v99_v17, %v734_v6 }
  0x40   :  { %v237_v31 = vadd.f32 %v236_v27, %v235_v21  ;;  %v264_v33 = vsel %vm89_vm1, %v259_v26, 0.0  ;;  %v92_v35 = vadd.f32 %v91_v32, %v90_v24  ;;  %v114_v38 = vcombine.high %v106_v18, %v106_v18 }
  0x41   :  { %v265_v36 = vadd.f32 %v264_v33, %v263_v30  ;;  %v118_v40 = vsel %vm89_vm1, %v106_v18, 0.0  ;;  %v155_v41 = vmul.f32 %v746_v14, %v746_v14  ;;  %v121_v46 = vsel %vm89_vm1, %v113_v37, 0.0 }
  0x42   :  { %v239_v39 = vadd.f32 %v238_v28, %v237_v31  ;;  %v94_v43 = vadd.f32 %v93_v29, %v92_v35  ;;  %v119_v45 = vsel %vm89_vm1, %v114_v38, 0.0  ;;  %v128_v50 = vcombine.high %v126_v42, %v126_v42 }
  0x43   :  { %v267_v44 = vadd.f32 %v266_v34, %v265_v36  ;;  %v120_v47 = vadd.f32 %v119_v45, %v118_v40  ;;  %v157_v48 = vcombine.high %v155_v41, %v155_v41  ;;  %v164_v49 = vrot.slane %v155_v41, %v734_v6  ;;  %v379_v45 = vld [vmem:[#allocation2 + $0xa] sm:$0x3] }
  0x44   :  { %240 = vadd.xlane.f32.xlu1 %v239_v39  ;;  %95 = vadd.xlane.f32.xlu0 %v94_v43  ;;  %v135_v51 = vrot.slane %v126_v42, %v734_v6  ;;  %v142_v59 = vrot.slane %v128_v50, %v734_v6  ;;  %v302_v62 = vcombine.high %v300_v52, %v300_v52  ;;  %v383_v50 = vld [vmem:[#allocation2 + $0xc] sm:$0x3] }
  0x45   :  { %v122_v55 = vadd.f32 %v121_v46, %v120_v47  ;;  %v171_v56 = vrot.slane %v157_v48, %v734_v6  ;;  %v172_v57 = vcombine.high %v164_v49, %v164_v49  ;;  %v176_v58 = vsel %vm89_vm1, %v164_v49, 0.0  ;;  %v358_v46 = vld [vmem:[#allocation2] sm:$0x3] }
  0x46   :  { %v143_v60 = vcombine.high %v135_v51, %v135_v51  ;;  %v147_v61 = vsel %vm89_vm1, %v135_v51, 0.0  ;;  %v309_v1 = vrot.slane %v300_v52, %v734_v6  ;;  %v150_v5 = vsel %vm89_vm1, %v142_v59, 0.0  ;;  %v363_v51 = vld [vmem:[#allocation2 + $0x2] sm:$0x3] }
  0x47   :  { %v177_v63 = vsel %vm89_vm1, %v172_v57, 0.0  ;;  %v179_v0 = vsel %vm89_vm1, %v171_v56, 0.0  ;;  %v316_v7 = vrot.slane %v302_v62, %v734_v6  ;;  %v280_v12 = vrot.slane %v271_v53, %v734_v6  ;;  %v371_v56 = vld [vmem:[#allocation2 + $0x6] sm:$0x3]  ;;  %v367_v57 = vld [vmem:[#allocation2 + $0x4] sm:$0x3] }
  0x48   :  { %268 = vadd.xlane.f32.xlu1 %v267_v44  ;;  %123 = vadd.xlane.f32.xlu0 %v122_v55  ;;  %v178_v3 = vadd.f32 %v177_v63, %v176_v58  ;;  %v148_v4 = vsel %vm89_vm1, %v143_v60, 0.0  ;;  %v317_v10 = vcombine.high %v309_v1, %v309_v1  ;;  %v321_v11 = vsel %vm89_vm1, %v309_v1, 0.0  ;;  %v391_v62 = vld [vmem:[#allocation2 + $0x10] sm:$0x3]  ;;  %v387_v1 = vld [vmem:[#allocation2 + $0xe] sm:$0x3] }
  0x49   :  { %v149_v9 = vadd.f32 %v148_v4, %v147_v61  ;;  %v324_v15 = vsel %vm89_vm1, %v316_v7, 0.0  ;;  %v287_v16 = vrot.slane %v273_v2, %v734_v6  ;;  %v331_v17 = vcombine.high %v329_v54, %v329_v54 }
  0x4a   :  { %v180_v13 = vadd.f32 %v179_v0, %v178_v3  ;;  %v322_v19 = vsel %vm89_vm1, %v317_v10, 0.0  ;;  %v288_v20 = vcombine.high %v280_v12, %v280_v12  ;;  %v292_v21 = vsel %vm89_vm1, %v280_v12, 0.0  ;;  %v395_v10 = vld [vmem:[#allocation2 + $0x12] sm:$0x3] }
  0x4b   :  { %v151_v18 = vadd.f32 %v150_v5, %v149_v9  ;;  %v323_v22 = vadd.f32 %v322_v19, %v321_v11  ;;  %v338_v23 = vrot.slane %v329_v54, %v734_v6  ;;  %v345_v24 = vrot.slane %v331_v17, %v734_v6 }
  0x4c   :  { %181 = vadd.xlane.f32.xlu1 %v180_v13  ;;  %v293_v25 = vsel %vm89_vm1, %v288_v20, 0.0  ;;  %v295_v26 = vsel %vm89_vm1, %v287_v16, 0.0  ;;  %v184_v27 = vmul.f32 %v746_v14, %v739_v8  ;;  %v662_v44 = vmov 0  }
  0x4d   :  { %152 = vadd.xlane.f32.xlu0 %v151_v18  ;;  %v325_v28 = vadd.f32 %v324_v15, %v323_v22  ;;  %v294_v29 = vadd.f32 %v293_v25, %v292_v21  ;;  %v346_v30 = vcombine.high %v338_v23, %v338_v23  ;;  %v350_v31 = vsel %vm89_vm1, %v338_v23, 0.0  ;;  %570 = vset.pattern.permute.xlu1 %v662_v44  ;;  %v375_v18 = vld [vmem:[#allocation2 + $0x8] sm:$0x3] }
  0x4e   :  { %v186_v32 = vcombine.high %v184_v27, %v184_v27  ;;  %v193_v33 = vrot.slane %v184_v27, %v734_v6  ;;  %v353_v36 = vsel %vm89_vm1, %v345_v24, 0.0  ;;  %569 = vset.pattern.permute.xlu0 %v662_v44 }
  0x4f   :  { %v296_v34 = vadd.f32 %v295_v26, %v294_v29  ;;  %v351_v35 = vsel %vm89_vm1, %v346_v30, 0.0 }
  0x50   :  { %326 = vadd.xlane.f32.xlu1 %v325_v28  ;;  %v352_v37 = vadd.f32 %v351_v35, %v350_v31  ;;  %v200_v38 = vrot.slane %v186_v32, %v734_v6  ;;  %v201_v39 = vcombine.high %v193_v33, %v193_v33  ;;  %v205_v8 = vsel %vm89_vm1, %v193_v33, 0.0 }
  0x51   :  { %297 = vadd.xlane.f32.xlu0 %v296_v34 }
  0x52   :  { %v354_v14 = vadd.f32 %v353_v36, %v352_v37  ;;  %v206_v40 = vsel %vm89_vm1, %v201_v39, 0.0  ;;  %v208_v41 = vsel %vm89_vm1, %v200_v38, 0.0 }
  0x53   :  { %v207_v42 = vadd.f32 %v206_v40, %v205_v8 }
  0x54   :  { %355 = vadd.xlane.f32.xlu1 %v354_v14 }
  0x55   :  { %v209_v43 = vadd.f32 %v208_v41, %v207_v42 }
  0x57   :  { %210 = vadd.xlane.f32.xlu0 %v209_v43 }
  0xd1   :  { %v241_v47 = vpop.xlane.xlu1 %240  ;;  %v96_v48 = vpop.xlane.xlu0 %95 }
  0xd2   :  { %v380_v6 = vadd.f32 %v379_v45, %v241_v47  ;;  %v359_v49 = vadd.f32 %v358_v46, %v96_v48 }
  0xd4   :  { %381 = vst.msk [vmem:[#allocation2 + $0xa] sm:$0x3] %vm56_vm0, %v380_v6  ;;  %361 = vst.msk [vmem:[#allocation2] sm:$0x3] %vm56_vm0, %v359_v49 }
  0xd5   :  { %v269_v52 = vpop.xlane.xlu1 %268  ;;  %v124_v54 = vpop.xlane.xlu0 %123 }
  0xd6   :  { %v384_v53 = vadd.f32 %v383_v50, %v269_v52  ;;  %v364_v55 = vadd.f32 %v363_v51, %v124_v54 }
  0xd8   :  { %385 = vst.msk [vmem:[#allocation2 + $0xc] sm:$0x3] %vm56_vm0, %v384_v53  ;;  %365 = vst.msk [vmem:[#allocation2 + $0x2] sm:$0x3] %vm56_vm0, %v364_v55 }
  0xd9   :  { %v182_v58 = vpop.xlane.xlu1 %181 }
  0xda   :  { %v372_v59 = vadd.f32 %v371_v56, %v182_v58  ;;  %v153_v60 = vpop.xlane.xlu0 %152 }
  0xdb   :  { %v368_v61 = vadd.f32 %v367_v57, %v153_v60  ;;  %v401_v63 = vld [vmem:[#allocation2] sm:$0x3]  ;;  %v477_v12 = vld [vmem:[#allocation2 + $0xa] sm:$0x3] }
  0xdc   :  { %373 = vst.msk [vmem:[#allocation2 + $0x6] sm:$0x3] %vm56_vm0, %v372_v59  ;;  %v407_v5 = vmul.f32 0.0026041667, %v401_v63  ;;  %v815_v23 = vmul.f32 0.0026041667, %v477_v12 }
  0xdd   :  { %369 = vst.msk [vmem:[#allocation2 + $0x4] sm:$0x3] %vm56_vm0, %v368_v61  ;;  %v327_v0 = vpop.xlane.xlu1 %326 }
  0xde   :  { %v392_v2 = vadd.f32 %v391_v62, %v327_v0  ;;  %v298_v3 = vpop.xlane.xlu0 %297  ;;  %v409_v20 = vmul.f32 %v407_v5, %v401_v63  ;;  %v484_v32 = vmul.f32 %v815_v23, %v477_v12 }
  0xdf   :  { %v402_v4 = vld [vmem:[#allocation2 + $0x2] sm:$0x3]  ;;  %v478_v7 = vld [vmem:[#allocation2 + $0xc] sm:$0x3]  ;;  %v388_v9 = vadd.f32 %v387_v1, %v298_v3 }
  0xe0   :  { %393 = vst.msk [vmem:[#allocation2 + $0x10] sm:$0x3] %vm56_vm0, %v392_v2  ;;  %v408_v11 = vmul.f32 0.0026041667, %v402_v4  ;;  %v813_v16 = vmul.f32 0.0026041667, %v478_v7  ;;  %v450_v36 = vmul.f32 %v402_v4, %v401_v63  ;;  %v524_v43 = vmul.f32 %v478_v7, %v477_v12 }
  0xe1   :  { %389 = vst.msk [vmem:[#allocation2 + $0xe] sm:$0x3] %vm56_vm0, %v388_v9  ;;  %v356_v13 = vpop.xlane.xlu1 %355 }
  0xe2   :  { %v421_v15 = vmul.f32 %v408_v11, %v402_v4  ;;  %v396_v17 = vadd.f32 %v395_v10, %v356_v13  ;;  %v495_v28 = vmul.f32 %v813_v16, %v478_v7  ;;  %v451_v14 = vmul.f32 0.0026041667, %v450_v36 }
  0xe3   :  { %v404_v19 = vld [vmem:[#allocation2 + $0x6] sm:$0x3]  ;;  %v525_v48 = vmul.f32 0.0026041667, %v524_v43  ;;  %v441_v50 = vsub.f32 %v407_v5, %v408_v11 }
  0xe4   :  { %v403_v21 = vld [vmem:[#allocation2 + $0x4] sm:$0x3]  ;;  %v422_v22 = vsub.f32 %v404_v19, %v421_v15  ;;  %397 = vst.msk [vmem:[#allocation2 + $0x12] sm:$0x3] %vm56_vm0, %v396_v17  ;;  %v211_v24 = vpop.xlane.xlu0 %210 }
  0xe5   :  { %v410_v25 = vsub.f32 %v403_v21, %v409_v20  ;;  %v376_v26 = vadd.f32 %v375_v18, %v211_v24  ;;  %v454_v6 = vadd.f32 %v404_v19, %v403_v21  ;;  %v442_v13 = vmul.f32 %v441_v50, %v441_v50 }
  0xe6   :  { %v423_v27 = vmax.f32 %v422_v22, 0.0  ;;  %v515_v19 = vsub.f32 %v815_v23, %v813_v16 }
  0xe7   :  { %v411_v29 = vmax.f32 %v410_v25, 0.0  ;;  %v819_v30 = vld [vmem:[#allocation2 + $0x10] sm:$0x3]  ;;  %377 = vst.msk [vmem:[#allocation2 + $0x8] sm:$0x3] %vm56_vm0, %v376_v26 }
  0xe8   :  { %v424_v31 = vmul.f32 0.002610966, %v423_v27  ;;  %v496_v33 = vsub.f32 %v819_v30, %v495_v28  ;;  %v824_v35 = vld [vmem:[#allocation2 + $0xe] sm:$0x3]  ;;  %v516_v28 = vmul.f32 %v515_v19, %v515_v19 }
  0xe9   :  { %v413_v34 = vmul.f32 0.002610966, %v411_v29  ;;  %v485_v37 = vsub.f32 %v824_v35, %v484_v32  ;;  %v528_v43 = vadd.f32 %v819_v30, %v824_v35 }
  0xea   :  { %v497_v38 = vmax.f32 %v496_v33, 0.0  ;;  %575 = vrsqrt.f32 %v424_v31  ;;  %vm427_vm2 = vcmp.eq.f32.partialorder %v424_v31, inf  ;;  %v430_v55 = vand.u32 2147483648, %v424_v31 }
  0xeb   :  { %577 = vrsqrt.f32 %v413_v34  ;;  %v486_v39 = vmax.f32 %v485_v37, 0.0  ;;  %v827_v46 = vld [vmem:[#allocation2 + $0x12] sm:$0x3]  ;;  %vm416_vm3 = vcmp.eq.f32.partialorder %v413_v34, inf  ;;  %v419_v56 = vand.u32 2147483648, %v413_v34 }
  0xec   :  { %v498_v8 = vmul.f32 0.002610966, %v497_v38  ;;  %v526_v53 = vsub.f32 %v827_v46, %v525_v48  ;;  %vm429_vm4 = vcmp.eq.f32.partialorder %v424_v31, 0.0  ;;  %vm418_vm5 = vcmp.eq.f32.partialorder %v413_v34, 0.0 }
  0xed   :  { %v487_v40 = vmul.f32 0.002610966, %v486_v39 }
  0xee   :  { %579 = vrsqrt.f32 %v498_v8  ;;  %v405_v41 = vld [vmem:[#allocation2 + $0x8] sm:$0x3]  ;;  %vm501_vm6 = vcmp.eq.f32.partialorder %v498_v8, inf  ;;  %vm503_vm8 = vcmp.eq.f32.partialorder %v498_v8, 0.0  ;;  %v527_v0 = vmul.f32 0.0026041667, %v526_v53 }
  0xef   :  { %v452_v42 = vsub.f32 %v405_v41, %v451_v14  ;;  %581 = vrsqrt.f32 %v487_v40  ;;  %v455_v45 = vmul.f32 2.0, %v405_v41  ;;  %v504_v2 = vand.u32 2147483648, %v498_v8 }
  0xf0   :  { %vm490_vm10 = vcmp.eq.f32.partialorder %v487_v40, inf  ;;  %v493_v10 = vand.u32 2147483648, %v487_v40  ;;  %vm492_vm11 = vcmp.eq.f32.partialorder %v487_v40, 0.0 }
  0xf1   :  { %v453_v44 = vmul.f32 0.0026041667, %v452_v42  ;;  %v456_v52 = vsub.f32 %v454_v6, %v455_v45  ;;  %v529_v42 = vmul.f32 2.0, %v827_v46 }
  0xf3   :  { %465 = vperm.xlu1 %570, %v453_v44   ;;  %v530_v44 = vsub.f32 %v528_v43, %v529_v42 }
  0xf4   :  { %v576_v47 = vpop.eup %575 }
  0xf5   :  { %v578_v49 = vpop.eup %577  ;;  %v426_v51 = vmul.f32 %v576_v47, %v424_v31 }
  0xf6   :  { %v415_v54 = vmul.f32 %v578_v49, %v413_v34 }
  0xf7   :  { %v428_v57 = vsel %vm427_vm2, %v424_v31, %v426_v51  ;;  %472 = vperm.xlu1 %570, %v456_v52  }
  0xf8   :  { %v580_v58 = vpop.eup %579  ;;  %v417_v59 = vsel %vm416_vm3, %v413_v34, %v415_v54  ;;  %v431_v60 = vsel %vm429_vm4, %v430_v55, %v428_v57 }
  0xf9   :  { %v420_v61 = vsel %vm418_vm5, %v419_v56, %v417_v59  ;;  %vm434_vm7 = vcmp.eq.f32.partialorder %v431_v60, 0.0  ;;  %v500_v62 = vmul.f32 %v580_v58, %v498_v8  ;;  %v582_v63 = vpop.eup %581 }
  0xfa   :  { %vm432_vm9 = vcmp.eq.f32.partialorder %v420_v61, 0.0  ;;  %v435_v1 = vsel %vm434_vm7, 1e-06, %v431_v60  ;;  %v489_v5 = vmul.f32 %v582_v63, %v487_v40 }
  0xfb   :  { %v433_v3 = vsel %vm432_vm9, 1e-06, %v420_v61  ;;  %v439_v4 = vmul.f32 %v435_v1, %v435_v1  ;;  %v502_v7 = vsel %vm501_vm6, %v498_v8, %v500_v62  ;;  %540 = vperm.xlu1 %570, %v527_v0  }
  0xfc   :  { %v438_v9 = vmul.f32 %v433_v3, %v433_v3  ;;  %v505_v11 = vsel %vm503_vm8, %v504_v2, %v502_v7  ;;  %v491_v12 = vsel %vm490_vm10, %v487_v40, %v489_v5  ;;  %v436_v15 = vmul.f32 %v435_v1, %v433_v3 }
  0xfd   :  { %vm508_vm12 = vcmp.eq.f32.partialorder %v505_v11, 0.0  ;;  %v494_v18 = vsel %vm492_vm11, %v493_v10, %v491_v12  ;;  %v446_v38 = vmul.f32 2.0, %v433_v3 }
  0xfe   :  { %v440_v17 = vadd.f32 %v439_v4, %v438_v9  ;;  %vm506_vm13 = vcmp.eq.f32.partialorder %v494_v18, 0.0  ;;  %v509_v20 = vsel %vm508_vm12, 1e-06, %v505_v11  ;;  %v437_v26 = vadd.f32 1e-06, %v436_v15 }
  0xff   :  { %v507_v22 = vsel %vm506_vm13, 1e-06, %v494_v18  ;;  %v513_v24 = vmul.f32 %v509_v20, %v509_v20  ;;  %v447_v16 = vmul.f32 %v446_v38, %v435_v1 }
 0x100   :  { %v443_v21 = vadd.f32 %v442_v13, %v440_v17  ;;  %v512_v25 = vmul.f32 %v507_v22, %v507_v22  ;;  %v510_v29 = vmul.f32 %v509_v20, %v507_v22  ;;  %v520_v39 = vmul.f32 2.0, %v507_v22 }
 0x102   :  { %v444_v27 = vadd.f32 1e-06, %v443_v21  ;;  %v514_v31 = vadd.f32 %v513_v24, %v512_v25  ;;  %v511_v34 = vadd.f32 1e-06, %v510_v29  ;;  %v521_v14 = vmul.f32 %v520_v39, %v509_v20 }
 0x104   :  { %v445_v32 = vmul.f32 %v444_v27, %v437_v26  ;;  %v517_v33 = vadd.f32 %v516_v28, %v514_v31 }
 0x106   :  { %583 = vrcp.f32 %v445_v32  ;;  %v518_v36 = vadd.f32 1e-06, %v517_v33 }
 0x108   :  { %v519_v37 = vmul.f32 %v518_v36, %v511_v34 }
 0x10a   :  { %585 = vrcp.f32 %v519_v37 }
 0x110   :  { %v584_v23 = vpop.eup %583 }
 0x111   :  { %v449_v8 = vmul.f32 %v584_v23, %v447_v16 }
 0x113   :  { %459 = vperm.xlu0 %569, %v449_v8  }
 0x114   :  { %v586_v40 = vpop.eup %585 }
 0x115   :  { %v523_v41 = vmul.f32 %v586_v40, %v521_v14 }
 0x117   :  { %533 = vperm.xlu1 %570, %v523_v41  }
 0x11b   :  { %547 = vperm.xlu1 %570, %v530_v44  }
 0x172   :  { %v466_v45 = vpop.permute.xlu1 %465 }
 0x173   :  { %558 = vst [vmem:[%s857_s4 + $0x2] sm:$0x3] %v466_v45 }
 0x176   :  { %v473_v47 = vpop.permute.xlu1 %472 }
 0x177   :  { %559 = vst [vmem:[%s857_s4 + $0x4] sm:$0x3] %v473_v47 }
 0x17a   :  { %v541_v6 = vpop.permute.xlu1 %540 }
 0x17b   :  { %561 = vst [vmem:[%s857_s4 + $0x8] sm:$0x3] %v541_v6 }
 0x192   :  { %v460_v46 = vpop.permute.xlu0 %459 }
 0x193   :  { %462 = vst [vmem:[%s857_s4] sm:$0x3] %v460_v46 }
 0x196   :  { %v534_v30 = vpop.permute.xlu1 %533 }
 0x197   :  { %560 = vst [vmem:[%s857_s4 + $0x6] sm:$0x3] %v534_v30 }
 0x19a   :  { %v548_v35 = vpop.permute.xlu1 %547 }
 0x19b   :  { %562 = vst [vmem:[%s857_s4 + $0xa] sm:$0x3] %v548_v35 }
 0x19c   :  { %556 = vsyncpa [#allocation4], 1 }
 0x19d   :  { %557 = vsyncpa [#allocation6], 1 }

</bundles_post_ra>
